<compile_context>
chip_gen: v5e
topology: v5e:2x2
jax: 0.10.0
libtpu: 0.0.40
codegen_flags: <defaults>
</compile_context>

<pallas_src>
import jax
import jax.numpy as jnp
from jax import lax
from jax.experimental import pallas as pl
from jax.experimental.pallas import tpu as pltpu

_LANES = 128
_SUBLANES = 8
_MAX_BLOCK_ROWS = 4096  # 4096 * 128 * 4 B = 2 MiB per input tile (f32)


def _make_kernel(block_rows, tiles_per_part, total, needs_mask):
    full_rows = total // _LANES           # rows whose 128 lanes are all valid
    rem = total - full_rows * _LANES      # valid lanes in row `full_rows` (0 -> none)

    def kernel(pos_ref, neg_ref, prb_ref, out_ref):
        p = pl.program_id(0)
        i = pl.program_id(1)

        @pl.when(i == 0)
        def _init():
            out_ref[...] = jnp.zeros_like(out_ref)

        x = pos_ref[...].astype(jnp.float32) - neg_ref[...].astype(jnp.float32)
        t = prb_ref[...].astype(jnp.float32)
        # Numerically stable BCE-with-logits (matches torch.nn.BCEWithLogitsLoss).
        per_elem = jnp.maximum(x, 0.0) - x * t + jnp.log1p(jnp.exp(-jnp.abs(x)))

        def _accumulate(vals):
            # VPU-only vreg-wise pairwise partial sum into the resident (8,128) block.
            out_ref[...] += vals.reshape(
                block_rows // _SUBLANES, _SUBLANES, _LANES).sum(axis=0)

        if not needs_mask:
            _accumulate(per_elem)
        else:
            tile_row0 = (p * tiles_per_part + i) * block_rows      # logical start row
            tile_is_full = tile_row0 + block_rows <= full_rows     # all elements valid

            @pl.when(tile_is_full)
            def _fast():            # hot path: no mask math on interior tiles
                _accumulate(per_elem)

            @pl.when(jnp.logical_not(tile_is_full))
            def _tail():            # only the tile(s) holding the ragged tail
                r = tile_row0 + lax.broadcasted_iota(jnp.int32, (block_rows, _LANES), 0)
                c = lax.broadcasted_iota(jnp.int32, (block_rows, _LANES), 1)
                # Row/lane comparison (no flat index) -> no int32 overflow.
                valid = (r < full_rows) | ((r == full_rows) & (c < rem))
                # Keep the select form: padded zeros would contribute log(2), and
                # OOB-read garbage may be Inf/NaN (select does not propagate it).
                _accumulate(jnp.where(valid, per_elem, 0.0))

    return kernel


def ranknet_loss(scores_pos, scores_neg, probs, *,
                 max_block_rows=_MAX_BLOCK_ROWS, num_parts=None):
    """Scalar mean RankNet (BCE-with-logits) loss, float32."""
    assert scores_pos.shape == scores_neg.shape == probs.shape
    total = int(scores_pos.size)

    # Lane-dense slab: (rows, 128).  Pad only up to a multiple of 128 lanes
    # (and to >= 8 rows for tiny inputs); never to grid alignment.
    rows = pl.cdiv(total, _LANES)
    slab_rows = max(rows, _SUBLANES)
    padded_len = slab_rows * _LANES

    block_rows = min(max_block_rows, slab_rows)
    block_rows = max(_SUBLANES, (block_rows // _SUBLANES) * _SUBLANES)

    num_tiles = pl.cdiv(slab_rows, block_rows)
    if num_parts is None:
        # 2-way "parallel" partition uses both TensorCores on v7x; harmless on
        # single-TC chips (at most one clamped, fully-masked extra tile).
        num_parts = 2 if num_tiles >= 2 else 1
    num_parts = max(1, min(num_parts, num_tiles))
    tiles_per_part = pl.cdiv(num_tiles, num_parts)
    last_tile = num_tiles - 1

    # Mask only needed when the grid does not exactly cover `total` elements.
    needs_mask = num_parts * tiles_per_part * block_rows * _LANES != total

    def to_slab(a):
        flat = jnp.ravel(a)
        if padded_len != total:
            flat = jnp.pad(flat, (0, padded_len - total))
        return flat.reshape(slab_rows, _LANES)

    pos2d = to_slab(scores_pos)
    neg2d = to_slab(scores_neg)
    prb2d = to_slab(probs)

    kernel = _make_kernel(block_rows, tiles_per_part, total, needs_mask)

    def in_index_map(p, i):
        t = p * tiles_per_part + i
        # Clamp logical tiles lying entirely past the slab (odd tile split); the
        # in-kernel mask zeroes their contribution.
        return (jnp.minimum(t, last_tile), 0)

    in_spec = pl.BlockSpec((block_rows, _LANES), in_index_map)
    # Per-partition (8,128) partial-sum block, resident across the streaming axis.
    out_spec = pl.BlockSpec((_SUBLANES, _LANES), lambda p, i: (p, 0))

    in_itemsize = (scores_pos.dtype.itemsize + scores_neg.dtype.itemsize
                   + probs.dtype.itemsize)
    out_bytes = num_parts * _SUBLANES * _LANES * 4
    cost = pl.CostEstimate(flops=8 * total,
                           transcendentals=2 * total,
                           bytes_accessed=total * in_itemsize + out_bytes)

    # 3 inputs x 2 buffers at 4096 rows (f32) = 12 MiB; keep the limit above the
    # v5e 16 MiB scoped default and well under v7x's 64 MiB physical VMEM.
    in_tile_bytes = 2 * block_rows * _LANES * in_itemsize
    vmem_limit = int(min(48 << 20, max(16 << 20, in_tile_bytes + (8 << 20))))

    partials = pl.pallas_call(
        kernel,
        out_shape=jax.ShapeDtypeStruct((num_parts * _SUBLANES, _LANES), jnp.float32),
        grid=(num_parts, tiles_per_part),
        in_specs=[in_spec, in_spec, in_spec],
        out_specs=out_spec,
        compiler_params=pltpu.CompilerParams(
            dimension_semantics=("parallel", "arbitrary"),
            vmem_limit_bytes=vmem_limit),
        cost_estimate=cost,
    )(pos2d, neg2d, prb2d)

    # Tiny finalize over (num_parts*8, 128) f32 + mean scale; fuses with
    # surrounding XLA ops.
    return jnp.sum(partials) / total


if __name__ == "__main__":
    key = jax.random.PRNGKey(0)

    def ref_loss(sp, sn, pr):
        x = sp.astype(jnp.float32) - sn.astype(jnp.float32)
        t = pr.astype(jnp.float32)
        return jnp.mean(jnp.maximum(x, 0.0) - x * t + jnp.log1p(jnp.exp(-jnp.abs(x))))

    # (shape, max_block_rows override) — small shapes that exercise every path.
    cases = [
        ((8, 128), _MAX_BLOCK_ROWS),   # aligned, single tile, no mask
        ((1000,), _MAX_BLOCK_ROWS),    # ragged last row -> pad-to-128 + masked tail
        ((40, 100), 8),                # multi-tile, 2 "parallel" partitions, masked tail
        ((24, 128), 8),                # odd tile count -> clamped fully-OOB logical tile
        ((20, 128), 8),                # final block runs off the slab edge (ragged DMA)
    ]
    for idx, (shape, mbr) in enumerate(cases):
        k1, k2, k3 = jax.random.split(jax.random.fold_in(key, idx), 3)
        scores_pos = jax.random.normal(k1, shape, dtype=jnp.float32)
        scores_neg = jax.random.normal(k2, shape, dtype=jnp.float32)
        probs = jax.random.uniform(k3, shape, dtype=jnp.float32)

        loss = ranknet_loss(scores_pos, scores_neg, probs, max_block_rows=mbr)
        jax.block_until_ready(loss)

        ref = ref_loss(scores_pos, scores_neg, probs)
        assert jnp.allclose(loss, ref, atol=1e-5, rtol=1e-5), (shape, float(loss), float(ref))

    print("KERNEL_OK")
</pallas_src>

<mosaic_0001>
module attributes {stable_mosaic.version = 11 : i64} {
  func.func @kernel(%arg0: i32, %arg1: i32, %arg2: memref<8x128xf32, #tpu.memory_space<vmem>>, %arg3: memref<8x128xf32, #tpu.memory_space<vmem>>, %arg4: memref<8x128xf32, #tpu.memory_space<vmem>>, %arg5: memref<8x128xf32, #tpu.memory_space<vmem>>) attributes {dimension_semantics = [#tpu.dimension_semantics<parallel>, #tpu.dimension_semantics<arbitrary>], iteration_bounds = array<i64: 1, 1>, scalar_prefetch = 0 : i64, scratch_operands = 0 : i64, tpu.core_type = #tpu.core_type<tc>, window_params = [{transform_indices = @transform_0, window_bounds = array<i64: 8, 128>}, {transform_indices = @transform_1, window_bounds = array<i64: 8, 128>}, {transform_indices = @transform_2, window_bounds = array<i64: 8, 128>}, {transform_indices = @transform_3, window_bounds = array<i64: 8, 128>}]} {
    %c0_i32 = arith.constant 0 : i32
    %0 = arith.cmpi eq, %arg1, %c0_i32 : i32
    %1 = arith.extui %0 : i1 to i32
    %c0_i32_0 = arith.constant 0 : i32
    %2 = arith.cmpi ne, %1, %c0_i32_0 : i32
    scf.if %2 {
      %cst_12 = arith.constant 0.000000e+00 : f32
      %22 = vector.broadcast %cst_12 : f32 to vector<8x128xf32>
      %c0_13 = arith.constant 0 : index
      %c0_14 = arith.constant 0 : index
      %23 = vector.load %arg5[%c0_13, %c0_14] : memref<8x128xf32, #tpu.memory_space<vmem>>, vector<8x128xf32>
      tpu.vector_store %arg5[%c0_13, %c0_14], %22 {strides = array<i32>} : memref<8x128xf32, #tpu.memory_space<vmem>>, vector<8x128xf32>,
    } else {
    }
    %c0 = arith.constant 0 : index
    %c0_1 = arith.constant 0 : index
    %3 = vector.load %arg2[%c0, %c0_1] : memref<8x128xf32, #tpu.memory_space<vmem>>, vector<8x128xf32>
    %c0_2 = arith.constant 0 : index
    %c0_3 = arith.constant 0 : index
    %4 = vector.load %arg3[%c0_2, %c0_3] : memref<8x128xf32, #tpu.memory_space<vmem>>, vector<8x128xf32>
    %5 = arith.subf %3, %4 : vector<8x128xf32>
    %c0_4 = arith.constant 0 : index
    %c0_5 = arith.constant 0 : index
    %6 = vector.load %arg4[%c0_4, %c0_5] : memref<8x128xf32, #tpu.memory_space<vmem>>, vector<8x128xf32>
    %cst = arith.constant 0.000000e+00 : f32
    %7 = vector.broadcast %cst : f32 to vector<8x128xf32>
    %8 = arith.maximumf %5, %7 : vector<8x128xf32>
    %9 = arith.mulf %5, %6 : vector<8x128xf32>
    %10 = arith.subf %8, %9 : vector<8x128xf32>
    %11 = math.absf %5 : vector<8x128xf32>
    %cst_6 = arith.constant 0.000000e+00 : f32
    %12 = vector.broadcast %cst_6 : f32 to vector<8x128xf32>
    %13 = arith.subf %12, %11 : vector<8x128xf32>
    %14 = math.exp %13 : vector<8x128xf32>
    %15 = math.log1p %14 : vector<8x128xf32>
    %16 = arith.addf %10, %15 : vector<8x128xf32>
    %c0_7 = arith.constant 0 : index
    %c0_8 = arith.constant 0 : index
    %17 = vector.load %arg5[%c0_7, %c0_8] : memref<8x128xf32, #tpu.memory_space<vmem>>, vector<8x128xf32>
    %18 = vector.shape_cast %16 : vector<8x128xf32> to vector<1x8x128xf32>
    %cst_9 = arith.constant dense<0.000000e+00> : vector<8x128xf32>
    %19 = vector.multi_reduction <add>, %18, %cst_9 [0] : vector<1x8x128xf32> to vector<8x128xf32>
    %20 = arith.addf %17, %19 : vector<8x128xf32>
    %c0_10 = arith.constant 0 : index
    %c0_11 = arith.constant 0 : index
    %21 = vector.load %arg5[%c0_10, %c0_11] : memref<8x128xf32, #tpu.memory_space<vmem>>, vector<8x128xf32>
    tpu.vector_store %arg5[%c0_10, %c0_11], %20 {strides = array<i32>} : memref<8x128xf32, #tpu.memory_space<vmem>>, vector<8x128xf32>,
    return
  }
  func.func @transform_0(%arg0: i32, %arg1: i32) -> (i32, i32) {
    %c1_i32 = arith.constant 1 : i32
    %0 = arith.muli %arg0, %c1_i32 : i32
    %1 = arith.addi %0, %arg1 : i32
    %c0_i32 = arith.constant 0 : i32
    %2 = arith.minsi %1, %c0_i32 : i32
    %c0_i32_0 = arith.constant 0 : i32
    %c0_i32_1 = arith.constant 0 : i32
    return %2, %c0_i32_0 : i32, i32
  }
  func.func @transform_1(%arg0: i32, %arg1: i32) -> (i32, i32) {
    %c1_i32 = arith.constant 1 : i32
    %0 = arith.muli %arg0, %c1_i32 : i32
    %1 = arith.addi %0, %arg1 : i32
    %c0_i32 = arith.constant 0 : i32
    %2 = arith.minsi %1, %c0_i32 : i32
    %c0_i32_0 = arith.constant 0 : i32
    %c0_i32_1 = arith.constant 0 : i32
    return %2, %c0_i32_0 : i32, i32
  }
  func.func @transform_2(%arg0: i32, %arg1: i32) -> (i32, i32) {
    %c1_i32 = arith.constant 1 : i32
    %0 = arith.muli %arg0, %c1_i32 : i32
    %1 = arith.addi %0, %arg1 : i32
    %c0_i32 = arith.constant 0 : i32
    %2 = arith.minsi %1, %c0_i32 : i32
    %c0_i32_0 = arith.constant 0 : i32
    %c0_i32_1 = arith.constant 0 : i32
    return %2, %c0_i32_0 : i32, i32
  }
  func.func @transform_3(%arg0: i32, %arg1: i32) -> (i32, i32) {
    %c0_i32 = arith.constant 0 : i32
    %c0_i32_0 = arith.constant 0 : i32
    return %arg0, %c0_i32 : i32, i32
  }
}

</mosaic_0001>

<bundles_post_ra>
// kernel: tpu_custom_call.1
= control target key start
LH: loop header
LB: loop body
LE: loop exit
PB: predicated region body
PF: predicated region fallthrough
CT: control target
= control target key end

     0   :  { %8 = vsyncpa [#allocation3], 0  ;;  %s281_s0 = inlined_call_operand.hbm [shape: f32[8,128], index: 0, kind: input, shape index: {}]   ;;  %s282_s1 = inlined_call_operand.hbm [shape: f32[8,128], index: 1, kind: input, shape index: {}]   ;;  %s283_s2 = inlined_call_operand.hbm [shape: f32[8,128], index: 2, kind: input, shape index: {}]   ;;  %s284_s3 = inlined_call_operand.hbm [shape: f32[8,128], index: 3, kind: output, shape index: {}]  }
   0x1   :  { %9 = vsyncpa [#allocation6], 0  ;;  %s37_s14 = sshll.u32 %s282_s1, 4  ;;  %s38_s14 = int_to_ptr.hbm [resolvable:$true] %s37_s14 }
   0x2   :  { %10 = vsyncpa [#allocation4], 0  ;;  %s245_s15 = smov [#allocation5]   ;;  %s21_s19 = sshll.u32 %s281_s0, 4  ;;  %s22_s19 = int_to_ptr.hbm [resolvable:$true] %s21_s19 }
   0x3   :  { %s39_s16 = sshll.u32 %s245_s15, 4  ;;  %s246_s20 = smov [#allocation2]   ;;  %s40_s16 = int_to_ptr.vmem [resolvable:$true] %s39_s16 }
   0x4   :  { %42 = dma.hbm_to_vmem [thread:$0]  %s38_s14, 128, %s40_s16, [#allocation6]  }
   0x5   :  { %s23_s21 = sshll.u32 %s246_s20, 4  ;;  %s53_s24 = sshll.u32 %s283_s2, 4  ;;  %s24_s21 = int_to_ptr.vmem [resolvable:$true] %s23_s21  ;;  %s54_s24 = int_to_ptr.hbm [resolvable:$true] %s53_s24 }
   0x6   :  { %26 = dma.hbm_to_vmem [thread:$0]  %s22_s19, 128, %s24_s21, [#allocation3]  }
   0x7   :  { %s247_s1 = smov [#allocation7]  }
   0x8   :  { %s55_s25 = sshll.u32 %s247_s1, 4  ;;  %s56_s25 = int_to_ptr.vmem [resolvable:$true] %s55_s25 }
   0x9   :  { %58 = dma.hbm_to_vmem [thread:$0]  %s54_s24, 128, %s56_s25, [#allocation6]  }
   0xa   :  { %239 = dma.done.wait [#allocation3], 128  }
   0xb   :  { %240 = vsyncadd [#allocation3], 4294967168 }
   0xc   :  { %241 = dma.done.wait [#allocation6], 256  }
   0xd   :  { %242 = vsyncadd [#allocation6], 4294967040  ;;  %v85_v0 = vld [vmem:[#allocation2] sm:$0xff]  ;;  %v86_v1 = vld [vmem:[#allocation5] sm:$0xff]  ;;  %s248_s0 = smov [#allocation8]   ;;  %s117_s28 = sshll.u32 %s284_s3, 4  ;;  %s118_s28 = int_to_ptr.hbm [resolvable:$true] %s117_s28 }
   0xe   :  { %v87_v2 = vsub.f32 %v85_v0, %v86_v1  ;;  %v88_v9 = vld [vmem:[#allocation7] sm:$0xff]  ;;  %s115_s2 = sshll.u32 %s248_s0, 4  ;;  %s116_s2 = int_to_ptr.vmem [resolvable:$true] %s115_s2 }
  0x10   :  { %v92_v3 = vand.u32 2147483647, %v87_v2  ;;  %v89_v11 = vmax.f32 %v87_v2, 0.0  ;;  %v90_v12 = vmul.f32 %v88_v9, %v87_v2 }
  0x12   :  { %v93_v4 = vsub.f32 0.0, %v92_v3  ;;  %v91_v16 = vsub.f32 %v89_v11, %v90_v12 }
  0x14   :  { %v94_v5 = vmul.f32 1.442695, %v93_v4 }
  0x16   :  { %139 = vpow2.f32 %v94_v5 }
  0x1c   :  { %v140_v6 = vpop.eup %139 }
  0x1d   :  { %v96_v7 = vadd.f32 1.0, %v140_v6  ;;  %v99_v8 = vmul.f32 -0.5, %v140_v6  ;;  %v102_v13 = vand.u32 2147483647, %v140_v6 }
  0x1f   :  { %141 = vlog2.f32 %v96_v7  ;;  %v100_v10 = vadd.f32 1.0, %v99_v8  ;;  %vm103_vm0 = vcmp.lt.f32.partialorder %v102_v13, 0.0004427343 }
  0x21   :  { %v101_v14 = vmul.f32 %v140_v6, %v100_v10 }
  0x25   :  { %v142_v15 = vpop.eup %141 }
  0x26   :  { %v98_v17 = vmul.f32 0.6931472, %v142_v15 }
  0x28   :  { %v104_v18 = vsel %vm103_vm0, %v101_v14, %v98_v17 }
  0x29   :  { %v105_v19 = vadd.f32 %v104_v18, %v91_v16 }
  0x2b   :  { %109 = vst [vmem:[#allocation8] sm:$0xff] %v105_v19 }
  0x2c   :  { %120 = dma.vmem_to_hbm [thread:$0]  %s116_s2, 128, %s118_s28, [#allocation4]  }
  0x2d   :  { %243 = dma.done.wait [#allocation4], 128  }
  0x2e   :  { %244 = vsyncadd [#allocation4], 4294967168 }
  0x2f   :  { %125 = vsyncpa [#allocation3], 1 }
  0x30   :  { %126 = vsyncpa [#allocation6], 1 }
  0x31   :  { %127 = vsyncpa [#allocation4], 1 }

</bundles_post_ra>
